<compile_context>
chip_gen: v6e
topology: v6e:2x2x1
jax: 0.10.0
libtpu: 0.0.40
codegen_flags: <defaults>
</compile_context>

<pallas_src>
import functools
import math

import jax
import jax.numpy as jnp
from jax.experimental import pallas as pl
from jax.experimental.pallas import tpu as pltpu


def _round_up(v, m):
    return ((v + m - 1) // m) * m


def _pick_row_tile(n_rows, k, d, itemsize, max_tile=1024,
                   per_tile_budget=4 * 1024 * 1024):
    """Row tile: as big as possible, but keep double-buffered in+out tiles under
    a conservative per-buffer VMEM budget (safe on v7x's 64 MiB VMEM) and keep
    the grid long enough for megacore sharding."""
    rt = min(int(max_tile), _round_up(n_rows, 8))
    while rt > 8 and 2 * rt * (k + d) * itemsize > per_tile_budget:
        rt = _round_up(rt // 2, 8)
    target_steps = min(8, pl.cdiv(n_rows, 8))
    rt = min(rt, _round_up(pl.cdiv(n_rows, target_steps), 8))
    return max(8, rt)


def _node_embeddings_kernel(seed_ref, w_ref, b_ref, x_ref, o_ref, *,
                            out_scale, dropout_rate, apply_dropout):
    # seed_ref: SMEM (1,) int32 (only used when dropout is active)
    # w_ref: VMEM (K, D) resident weights;  b_ref: VMEM (1, D) bias
    # x_ref / o_ref: VMEM row tiles (tm, K) / (tm, D)
    x = x_ref[...]
    y = jnp.dot(x, w_ref[...], preferred_element_type=jnp.float32)
    y = y + b_ref[...].astype(jnp.float32)

    if apply_dropout:
        # Inverted dropout with the on-chip PRNG (torch RNG stream not reproduced).
        pltpu.prng_seed(seed_ref[0] + pl.program_id(0))
        bits = pltpu.prng_random_bits(y.shape)
        if bits.dtype != jnp.dtype(jnp.int32):
            bits = pltpu.bitcast(bits, jnp.int32)
        r = jnp.bitwise_and(bits, jnp.int32(0x7FFFFFFF))        # uniform in [0, 2^31)
        thresh = jnp.int32(int(dropout_rate * 2147483648.0))
        keep_scale = 1.0 / (1.0 - dropout_rate)
        y = jnp.where(r < thresh, 0.0, y * keep_scale)

    o_ref[...] = (y * out_scale).astype(o_ref.dtype)


def node_embeddings(x, weight, bias, *, dropout_rate=0.0, training=False,
                    seed=0, row_tile=1024):
    """Node_Embeddings forward: dropout(x @ W + b) * sqrt(d_emb).

    x: [..., d_atom-1]; weight: [d_atom-1, d_emb]; bias: [d_emb].
    Dropout is only applied when training=True and dropout_rate > 0
    (identity at inference, matching nn.Dropout.eval()).
    """
    orig_shape = x.shape
    K = orig_shape[-1]
    D = weight.shape[-1]
    N = 1
    for s in orig_shape[:-1]:
        N *= s

    x2 = x.reshape(N, K)
    b2 = bias.reshape(1, D)
    seed_arr = jnp.asarray([seed], dtype=jnp.int32)

    apply_dropout = bool(training) and float(dropout_rate) > 0.0
    out_scale = float(math.sqrt(D))

    itemsize = jnp.dtype(x.dtype).itemsize
    rt = _pick_row_tile(N, K, D, itemsize, max_tile=int(row_tile))
    grid_len = pl.cdiv(N, rt)

    kernel = functools.partial(
        _node_embeddings_kernel,
        out_scale=out_scale,
        dropout_rate=float(dropout_rate),
        apply_dropout=apply_dropout,
    )

    w_itemsize = jnp.dtype(weight.dtype).itemsize
    flops = 2 * N * K * D + 2 * N * D
    bytes_accessed = (N * K + N * D) * itemsize + (K * D + D) * w_itemsize

    # Only raise the scoped-VMEM limit if the tiles actually need it
    # (v5e's default scoped limit is ~16 MiB); otherwise leave defaults.
    tile_bytes = 2 * rt * (K + D) * itemsize + (K * D + D) * w_itemsize
    cp_kwargs = {"dimension_semantics": ("parallel",)}
    if tile_bytes > 12 * 1024 * 1024:
        cp_kwargs["vmem_limit_bytes"] = min(64 * 1024 * 1024, int(2 * tile_bytes))

    out = pl.pallas_call(
        kernel,
        out_shape=jax.ShapeDtypeStruct((N, D), x.dtype),
        grid_spec=pltpu.PrefetchScalarGridSpec(
            num_scalar_prefetch=0,
            grid=(grid_len,),
            in_specs=[
                pl.BlockSpec(memory_space=pltpu.MemorySpace.SMEM),  # seed scalar
                pl.BlockSpec((K, D), lambda i: (0, 0)),             # weight (resident)
                pl.BlockSpec((1, D), lambda i: (0, 0)),             # bias (resident)
                pl.BlockSpec((rt, K), lambda i: (i, 0)),            # x row tile
            ],
            out_specs=pl.BlockSpec((rt, D), lambda i: (i, 0)),
        ),
        compiler_params=pltpu.CompilerParams(**cp_kwargs),
        cost_estimate=pl.CostEstimate(
            flops=flops, transcendentals=0, bytes_accessed=bytes_accessed),
    )(seed_arr, weight, b2, x2)

    return out.reshape(orig_shape[:-1] + (D,))


if __name__ == "__main__":
    key = jax.random.PRNGKey(0)
    # Small shapes consistent with the module: batch=2, seq(nodes)=8,
    # d_atom=28 -> in_features=27, d_emb=32.
    B, S = 2, 8
    d_atom, d_emb = 28, 32
    K = d_atom - 1

    kx, kw, kb = jax.random.split(key, 3)
    x = jax.random.normal(kx, (B, S, K), dtype=jnp.float32)
    # nn.Linear default init: U(-1/sqrt(fan_in), 1/sqrt(fan_in))
    lim = 1.0 / math.sqrt(K)
    W = jax.random.uniform(kw, (K, d_emb), minval=-lim, maxval=lim, dtype=jnp.float32)
    b = jax.random.uniform(kb, (d_emb,), minval=-lim, maxval=lim, dtype=jnp.float32)

    # Inference-mode forward (nn.Dropout is identity in eval()).
    y = node_embeddings(x, W, b, dropout_rate=0.1, training=False)
    y = jax.block_until_ready(y)

    # Plain-JAX reference.
    y_ref = (jnp.einsum("bsk,kd->bsd", x, W,
                        precision=jax.lax.Precision.HIGHEST) + b) * math.sqrt(d_emb)
    assert jnp.allclose(y, y_ref, atol=2e-3, rtol=2e-3), "mismatch vs reference"

    print("KERNEL_OK")
</pallas_src>

<mosaic_0001>
module attributes {stable_mosaic.version = 11 : i64} {
  func.func @_node_embeddings_kernel(%arg0: i32, %arg1: memref<1xi32, #tpu.memory_space<smem>>, %arg2: memref<27x32xf32, #tpu.memory_space<vmem>>, %arg3: memref<1x32xf32, #tpu.memory_space<vmem>>, %arg4: memref<8x27xf32, #tpu.memory_space<vmem>>, %arg5: memref<8x32xf32, #tpu.memory_space<vmem>>) attributes {dimension_semantics = [#tpu.dimension_semantics<parallel>], iteration_bounds = array<i64: 2>, scalar_prefetch = 0 : i64, scratch_operands = 0 : i64, tpu.core_type = #tpu.core_type<tc>, window_params = [{transform_indices = @transform_0, window_bounds = array<i64: 1>}, {pipeline_mode = #tpu.pipeline_mode<synchronous>, transform_indices = @transform_1, window_bounds = array<i64: 27, 32>}, {pipeline_mode = #tpu.pipeline_mode<synchronous>, transform_indices = @transform_2, window_bounds = array<i64: 1, 32>}, {transform_indices = @transform_3, window_bounds = array<i64: 8, 27>}, {transform_indices = @transform_4, window_bounds = array<i64: 8, 32>}]} {
    %c0 = arith.constant 0 : index
    %c0_0 = arith.constant 0 : index
    %0 = vector.load %arg4[%c0, %c0_0] : memref<8x27xf32, #tpu.memory_space<vmem>>, vector<8x27xf32>
    %c0_1 = arith.constant 0 : index
    %c0_2 = arith.constant 0 : index
    %1 = vector.load %arg2[%c0_1, %c0_2] : memref<27x32xf32, #tpu.memory_space<vmem>>, vector<27x32xf32>
    %cst = arith.constant dense<0.000000e+00> : vector<8x32xf32>
    %2 = tpu.matmul %0, %1, %cst {dimension_numbers = #tpu.dot_dimension_numbers<[1], [0], [0], [1], [0, 0, 1, 1], [], []>} : vector<8x27xf32>, vector<27x32xf32>, vector<8x32xf32> -> vector<8x32xf32>
    %c0_3 = arith.constant 0 : index
    %c0_4 = arith.constant 0 : index
    %3 = vector.load %arg3[%c0_3, %c0_4] : memref<1x32xf32, #tpu.memory_space<vmem>>, vector<1x32xf32>
    %4 = vector.broadcast %3 : vector<1x32xf32> to vector<8x32xf32>
    %5 = arith.addf %2, %4 : vector<8x32xf32>
    %cst_5 = arith.constant 5.65685415 : f32
    %6 = vector.broadcast %cst_5 : f32 to vector<8x32xf32>
    %7 = arith.mulf %5, %6 : vector<8x32xf32>
    %c0_6 = arith.constant 0 : index
    %c0_7 = arith.constant 0 : index
    %8 = vector.load %arg5[%c0_6, %c0_7] : memref<8x32xf32, #tpu.memory_space<vmem>>, vector<8x32xf32>
    tpu.vector_store %arg5[%c0_6, %c0_7], %7 {strides = array<i32>} : memref<8x32xf32, #tpu.memory_space<vmem>>, vector<8x32xf32>,
    return
  }
  func.func @transform_0(%arg0: i32) -> i32 {
    %c0_i32 = arith.constant 0 : i32
    %c0_i32_0 = arith.constant 0 : i32
    return %c0_i32 : i32
  }
  func.func @transform_1(%arg0: i32) -> (i32, i32) {
    %c0_i32 = arith.constant 0 : i32
    %c0_i32_0 = arith.constant 0 : i32
    %c0_i32_1 = arith.constant 0 : i32
    return %c0_i32, %c0_i32_0 : i32, i32
  }
  func.func @transform_2(%arg0: i32) -> (i32, i32) {
    %c0_i32 = arith.constant 0 : i32
    %c0_i32_0 = arith.constant 0 : i32
    %c0_i32_1 = arith.constant 0 : i32
    return %c0_i32, %c0_i32_0 : i32, i32
  }
  func.func @transform_3(%arg0: i32) -> (i32, i32) {
    %c0_i32 = arith.constant 0 : i32
    %c0_i32_0 = arith.constant 0 : i32
    return %arg0, %c0_i32 : i32, i32
  }
  func.func @transform_4(%arg0: i32) -> (i32, i32) {
    %c0_i32 = arith.constant 0 : i32
    %c0_i32_0 = arith.constant 0 : i32
    return %arg0, %c0_i32 : i32, i32
  }
}

</mosaic_0001>

<bundles_post_ra>
// kernel: tpu_custom_call.1
= control target key start
LH: loop header
LB: loop body
LE: loop exit
PB: predicated region body
PF: predicated region fallthrough
CT: control target
= control target key end

     0   :  { %10 = vsyncpa [#allocation4], 0  ;;  %s825_s0 = inlined_call_operand.<no memory space> [shape: s32[1], index: 0, kind: input, shape index: {}]   ;;  %s826_s1 = inlined_call_operand.hbm [shape: f32[27,32], index: 1, kind: input, shape index: {}]   ;;  %s827_s2 = inlined_call_operand.vmem [shape: f32[1,32], index: 2, kind: input, shape index: {}]   ;;  %s828_s3 = inlined_call_operand.hbm [shape: f32[16,27], index: 3, kind: input, shape index: {}]   ;;  %s829_s4 = inlined_call_operand.hbm [shape: f32[16,32], index: 4, kind: output, shape index: {}]  }
   0x1   :  { %11 = vsyncpa [#allocation7], 0 }
   0x2   :  { %13 = vsyncpa [#allocation7 + $0x1], 0 }
   0x3   :  { %14 = vsyncpa [#allocation5], 0 }
   0x4   :  { %16 = vsyncpa [#allocation5 + $0x1], 0  ;;  %s668_s15 = smov 0   ;;  %s670_s0 = smov 0  }
   0x5   :  { %s672_s16 = smov 0   ;;  %s674_s17 = smov 0  }
   0x6 LB: > { %s689_s18 = sadd.s32 4294967295, %s634_s17   ;;  %s418_s19 = sadd.s32 4294967294, %s634_s17   ;;  %s634_s17 = sphi %s674_s17, %s851_s17   ;;  %s630_s16 = sphi %s672_s16, %s850_s16   ;;  %s626_s0 = sphi %s670_s0, %s849_s0   ;;  %s622_s15 = sphi %s668_s15, %s848_s15  }
   0x7   : > { %p105_p0 = scmp.ne.s32.totalorder %s626_s0, %s622_s15  ;;  %p830_p1 = scmp.eq.s32.totalorder %s689_s18, 0 }
   0x8   : > { %p135_p3 = scmp.eq.s32.totalorder %s418_s19, 1  ;;  %p419_p5 = scmp.ge.s32.totalorder %s634_s17, 1 }
   0x9   : > { %p698_p4 = por %p830_p1, %p105_p0  ;;  %p142_p7 = scmp.lt.s32.totalorder %s634_s17, 3 }
   0xa   : > { %p703_p6 = por %p135_p3, %p105_p0  ;;  %s636_s23 = smov [#allocation3]  }
   0xb   : > { %s834_s20 = scalar_select %p698_p4, 1, 0 }
   0xc   : > { %s835_s21 = scalar_select %p703_p6, 1, 0 }
   0xd   : > { %p708_p8 = pnand %p419_p5, %p142_p7  ;;  %s157_s24 = sshll.u32 %s636_s23, 4  ;;  %s158_s24 = int_to_ptr.vmem [resolvable:$true] %s157_s24 }
   0xe   : > { %s722_s26 = sadd.s32 1, %s634_s17   ;;  %s92_s27 = sadd.s32 1, %s630_s16 }
   0xf   : > { %s836_s22 = scalar_select %p708_p8, 1, 0 }
  0x10   : > { %p459_p9 = pneg %p708_p8  ;;  %s89_s28 = ssub.s32 %s634_s17, %s722_s26 }
  0x11   : > { %s523_s29 = scalar_lea.vmem %s158_s24, 512  ;;  %p531_p5 = scmp.lt.s32.totalorder %s158_s24, %s158_s24 }
  0x12   : > { %p717_p11 = pnand %p459_p9, %p830_p1  ;;  %p524_p13 = scmp.ne.s32.totalorder %s158_s24, %s523_s29 }
  0x13   : > { %p532_p7 = scmp.lt.s32.totalorder %s523_s29, %s523_s29 }
  0x14   : > { %p514_p12 = pneg %p717_p11 }
  0x15   : > { %p533_p10 = por %p532_p7, %p531_p5 }
  0x16   : > { %p526_p0 = pnand %p524_p13, %p514_p12 }
  0x18   : > { %p527_p3 = pneg %p526_p0 }
  0x1a   : > { %p534_p2 = pnand %p533_p10, %p527_p3 }
  0x1c   : > { %537 = shalt.err (!%p534_p2)
}
  0x1d   : > { %s637_s30 = smov 128   ;;  %s638_s5 = smov 8  }
  0x1e   : > { %462 = dma.hbm_to_vmem [thread:$0]  (!%p717_p11), %s826_s1, 512, %s158_s24, [#allocation4], %s637_s30, %s637_s30, %s638_s5  }
  0x1f   : > { %p90_p9 = scmp.eq.s32.totalorder %s89_s28, 0  ;;  %p99_p12 = scmp.ne.s32.totalorder %s630_s16, %s626_s0 }
  0x20   : > { %p100_p10 = scmp.eq.s32.totalorder %s634_s17, 0  ;;  %p472_p2 = scmp.lt.s32.totalorder %s634_s17, 2 }
  0x21   : > { %s739_s8 = scalar_select %p90_p9, %s630_s16, %s92_s27  }
  0x22   : > { %p101_p13 = por %p100_p10, %p99_p12  ;;  %p838_p0 = scmp.eq.s32.totalorder %s689_s18, 1 }
  0x23   : > { %s174_s10 = sand.u32 1, %s630_s16   ;;  %s423_s11 = sshll.u32 %s634_s17, 7 }
  0x24   : > { %p743_p3 = por %p838_p0, %p99_p12  ;;  %s422_s12 = sshll.u32 %s174_s10, 3 }
  0x25   : > { %s752_s19 = scalar_lea.hbm %s828_s3, %s423_s11  ;;  %s178_s23 = scalar_lea.vmem [#allocation6], %s422_s12 }
  0x26   : > { %s839_s9 = scalar_select %p743_p3, 1, 0 }
  0x27   : > { %s185_s24 = sshll.u32 %s178_s23, 4  ;;  %p754_p11 = pnand %p472_p2, %p101_p13  ;;  %s186_s24 = int_to_ptr.vmem [resolvable:$true] %s185_s24 }
  0x28   : > { %s175_s27 = scalar_lea.sflag [#allocation7], %s174_s10  ;;  %s538_s28 = scalar_lea.hbm %s752_s19, 128 }
  0x29   : > { %p539_p5 = scmp.ne.s32.totalorder %s752_s19, %s538_s28  ;;  %p540_p7 = pneg %p754_p11 }
  0x2a   : > { %s543_s5 = scalar_lea.hbm %s828_s3, 256  ;;  %p544_p10 = scmp.lt.s32.totalorder %s752_s19, %s828_s3 }
  0x2b   : > { %p541_p9 = pnand %p540_p7, %p539_p5  ;;  %p545_p2 = scmp.lt.s32.totalorder %s543_s5, %s538_s28 }
  0x2d   : > { %p542_p12 = pneg %p541_p9  ;;  %p546_p13 = por %p545_p2, %p544_p10 }
  0x2f   : > { %p547_p0 = pnand %p546_p13, %p542_p12 }
  0x31   : > { %550 = shalt.err (!%p547_p0)
}
  0x32   : > { %s551_s11 = scalar_lea.vmem %s186_s24, 128  ;;  %s639_s10 = smov [#allocation6]  }
  0x33   : > { %p552_p1 = scmp.ne.s32.totalorder %s186_s24, %s551_s11  ;;  %s556_s12 = sshll.u32 %s639_s10, 4  ;;  %s557_s12 = int_to_ptr.vmem [resolvable:$false] %s556_s12 }
  0x34   : > { %s558_s13 = scalar_lea.vmem %s557_s12, 256  ;;  %p559_p5 = scmp.lt.s32.totalorder %s186_s24, %s557_s12 }
  0x35   : > { %p554_p6 = pnand %p552_p1, %p540_p7  ;;  %p560_p9 = scmp.lt.s32.totalorder %s558_s13, %s551_s11 }
  0x37   : > { %p555_p3 = pneg %p554_p6  ;;  %p561_p4 = por %p560_p9, %p559_p5 }
  0x39   : > { %p562_p8 = pnand %p561_p4, %p555_p3 }
  0x3b   : > { %565 = shalt.err (!%p562_p8)
}
  0x3c   : > { %466 = dma.hbm_to_vmem [thread:$0]  (!%p754_p11), %s752_s19, 128, %s186_s24, %s175_s27  }
  0x3d   : > { %p841_p12 = scmp.ne.s32.totalorder %s836_s22, 0 }
  0x3e   : > { %p842_p10 = scmp.eq.s32.totalorder (!%p841_p12), %s689_s18, 0 }
  0x3f   : > { %194 = sbr.rel (%p841_p12) target bundleno = 292 (0x124), region = 36 }
  0x44   : > { %609 = dma.done.wait (%p842_p10), [#allocation4], 512   ;;  %p843_p1 = pmov %p842_p10 }
  0x45   : > { %s779_s14 = sand.u32 1, %s626_s0   ;;  %p844_p4 = scmp.ne.s32.totalorder %s834_s20, 0 }
  0x46   : > { %611 = vsyncadd (%p843_p1), [#allocation4], 4294966784  ;;  %s426_s23 = sshll.u32 %s779_s14, 3  ;;  %s201_s28 = scalar_lea.sflag [#allocation7], %s779_s14 }
  0x47   : > { %s204_s25 = scalar_lea.vmem [#allocation6], %s426_s23 }
  0x48   : > { %613 = dma.done.wait (%p844_p4), %s201_s28, 128  }
  0x49   : > { %615 = vsyncadd (%p844_p4), %s201_s28, 4294967168  ;;  %v640_v0 = vmov 0.0   ;;  %vm641_vm0 = vmmov 0   ;;  %vm245_vm1 = vcmask 1042432   ;;  %v233_v1 = vld [vmem:[#allocation3 + $0x18] sm:$0x7] }
  0x4a   : > { %440 = vmatprep.subr.mxu0 %v640_v0  ;;  %448 = vmatprep.mubr.msk.f32.mxu0 %vm641_vm0, %v640_v0  ;;  %v232_v2 = vld [vmem:[#allocation3 + $0x10] sm:$0xff]  ;;  %v231_v3 = vld [vmem:[#allocation3 + $0x8] sm:$0xff]  ;;  %v230_v4 = vld [vmem:[#allocation3] sm:$0xff]  ;;  %vm241_vm2 = vcmask 220160   ;;  %s432_s19 = sshll.u32 %s689_s18, 7  ;;  %s228_s24 = scalar_lea.vmem [#allocation8], %s426_s23 }
  0x4b   : > { %441 = vmatpush3.msk.msra.mxu0 %vm245_vm1, %v233_v1  ;;  %v229_v5 = vld [vmem:[%s204_s25] sm:$0xff]  ;;  %s336_s27 = sshll.u32 %s228_s24, 4  ;;  %vm320_vm3 = vcmask 261120   ;;  %s334_s5 = scalar_lea.hbm %s829_s4, %s432_s19  ;;  %s337_s27 = int_to_ptr.vmem [resolvable:$true] %s336_s27 }
  0x4c   : > { %442 = vmatprep.subr.mxu0 %v640_v0  ;;  %v428_v6 = vld [vmem:[%s827_s2] ss:$0 sm:$0xff]  ;;  %s323_s6 = scalar_lea.sflag [#allocation5], %s779_s14  ;;  %s566_s7 = scalar_lea.vmem %s337_s27, 128 }
  0x4d   : > { %443 = vmatpush3.msra.mxu0 %v232_v2  ;;  %p567_p6 = scmp.ne.s32.totalorder %s337_s27, %s566_s7  ;;  %p845_p8 = scmp.ne.s32.totalorder %s839_s9, 0 }
  0x4e   : > { %444 = vmatprep.subr.mxu0 %v640_v0  ;;  %s642_s11 = smov [#allocation8]  }
  0x4f   : > { %445 = vmatpush3.msra.mxu0 %v231_v3  ;;  %p568_p3 = pnand %p567_p6, %p845_p8  ;;  %s570_s18 = sshll.u32 %s642_s11, 4  ;;  %s571_s18 = int_to_ptr.vmem [resolvable:$false] %s570_s18 }
  0x50   : > { %446 = vmatprep.subr.mxu0 %v640_v0  ;;  %s572_s10 = scalar_lea.vmem %s571_s18, 256  ;;  %p573_p7 = scmp.lt.s32.totalorder %s337_s27, %s571_s18 }
  0x51   : > { %447 = vmatpush3.msra.mxu0 %v230_v4  ;;  %p569_p11 = pneg %p568_p3  ;;  %p574_p2 = scmp.lt.s32.totalorder %s572_s10, %s566_s7 }
  0x52   : > { %449 = vmatmul.mubr.msk.f32.vlgmr.msra.gmra.mxu0 %vm241_vm2, %v229_v5 }
  0x53   : > { %p575_p13 = por %p574_p2, %p573_p7 }
  0x55   : > { %p576_p0 = pnand %p575_p13, %p569_p11 }
 0x112   : > { %v315_v7 = vpop.f32.mrf.mxu0 }
 0x113   : > { %v316_v8 = vadd.f32 %v428_v6, %v315_v7 }
 0x114   : > { %v450_v9 = vpop.f32.mrf.mxu0 }
 0x115   : > { %v319_v10 = vmul.f32 5.656854, %v316_v8 }
 0x117   : > { %321 = vst.msk [vmem:[%s228_s24] sm:$0xff] %vm320_vm3, %v319_v10 }
 0x118   : > { %579 = shalt.err (!%p576_p0)
}
 0x119   : > { %s580_s12 = scalar_lea.hbm %s334_s5, 128  ;;  %s584_s23 = scalar_lea.hbm %s829_s4, 256 }
 0x11a   : > { %p581_p5 = scmp.ne.s32.totalorder %s334_s5, %s580_s12  ;;  %p585_p10 = scmp.lt.s32.totalorder %s334_s5, %s829_s4 }
 0x11b   : > { %p586_p1 = scmp.lt.s32.totalorder %s584_s23, %s580_s12 }
 0x11c   : > { %p582_p9 = pnand %p581_p5, %p845_p8 }
 0x11d   : > { %p587_p4 = por %p586_p1, %p585_p10 }
 0x11e   : > { %p583_p12 = pneg %p582_p9 }
 0x120   : > { %p588_p6 = pnand %p587_p4, %p583_p12 }
 0x122   : > { %591 = shalt.err (!%p588_p6)
}
 0x123   : > { %457 = dma.vmem_to_hbm [thread:$0]  (%p845_p8), %s337_s27, 128, %s334_s5, %s323_s6  }
 0x124 PF: > { %s348_s20 = sand.u32 1, %s622_s15   ;;  %p846_p3 = scmp.ne.s32.totalorder %s835_s21, 0 }
 0x125   : > { %p847_p11 = scmp.ge.s32.totalorder %s634_s17, 2  ;;  %s349_s22 = scalar_lea.sflag [#allocation5], %s348_s20 }
 0x127   : > { %p468_p7 = pnand %p847_p11, %p846_p3 }
 0x129   : > { %p469_p2 = pneg %p468_p7 }
 0x12b   : > { %617 = dma.done.wait (%p469_p2), %s349_s22, 128  }
 0x12c   : > { %619 = vsyncadd (%p469_p2), %s349_s22, 4294967168  ;;  %p19_p13 = scmp.ge.s32.totalorder %s722_s26, 4   ;;  %s848_s15 = smov %s626_s0 }
 0x12d   : > { %s849_s0 = smov %s630_s16  ;;  %s850_s16 = smov %s739_s8 }
 0x12e   : > { %s851_s17 = smov %s722_s26  ;;  %21 = sbr.rel (!%p19_p13) target bundleno = 6 (0x6), region = 86 }
 0x133   :  { %354 = vsyncpa [#allocation4], 1 }
 0x134   :  { %356 = vsyncpa [#allocation4 + $0x1], 1 }
 0x135   :  { %357 = vsyncpa [#allocation7], 1 }
 0x136   :  { %359 = vsyncpa [#allocation7 + $0x1], 1 }
 0x137   :  { %360 = vsyncpa [#allocation5], 1 }
 0x138   :  { %362 = vsyncpa [#allocation5 + $0x1], 1 }

</bundles_post_ra>
